<compile_context>
chip_gen: v6e
topology: v6e:2x2x1
jax: 0.10.0
libtpu: 0.0.40
codegen_flags: <defaults>
</compile_context>

<pallas_src>
import functools

import jax
import jax.numpy as jnp
from jax.experimental import pallas as pl
from jax.experimental.pallas import tpu as pltpu

SUBLANE = 8  # vreg sublane width (second-to-last dim granularity)


def _round_up(x, m):
    return (x + m - 1) // m * m


def _vmem_capacity_bytes():
    """Per-generation VMEM capacity (v5e/v6e: 128 MiB, v7x: 64 MiB)."""
    try:
        return int(pltpu.get_tpu_info().vmem_capacity_bytes)
    except Exception:
        return 64 << 20  # conservative (v7x) fallback


def _make_fused_encoder_kernel(num_layers, matmul_dtype):
    """Kernel: refs = (x, w0, b0, w1, b1, ..., out).

    Weights arrive pre-cast to `matmul_dtype` (bf16 MXU fast path); the
    matmul accumulator, bias-add and ReLU stay in f32 (v5e-safe).
    """

    def kernel(*refs):
        x_ref = refs[0]
        o_ref = refs[-1]
        h = x_ref[...].astype(matmul_dtype)                 # (tb, d0)
        for i in range(num_layers):
            w = refs[1 + 2 * i][...]                        # (d_i, d_{i+1}) matmul_dtype
            b = refs[2 + 2 * i][...]                        # (1,  d_{i+1}) f32
            y = jnp.dot(h, w, preferred_element_type=jnp.float32)
            a = jnp.maximum(y + b, 0.0)                     # f32 bias + ReLU
            h = a.astype(matmul_dtype) if i + 1 < num_layers else a
        o_ref[...] = h.astype(o_ref.dtype)

    return kernel


@functools.partial(jax.jit,
                   static_argnames=("batch_tile", "matmul_dtype", "out_dtype"))
def encoder_forward(x, params, batch_tile=1024, matmul_dtype=jnp.bfloat16,
                    out_dtype=None):
    """Fused Encoder.forward: relu(...relu(relu(x@W0+b0)@W1+b1)...@WL+bL)."""
    B, data_dim = x.shape
    dims = [data_dim] + [w.shape[1] for (w, _) in params]
    num_layers = len(params)
    mm_dt = jnp.dtype(matmul_dtype)
    out_dt = jnp.dtype(out_dtype) if out_dtype is not None else x.dtype

    # Batch tiling: sublane-aligned; keep >=2 grid steps when the batch
    # allows it so the "parallel" axis can shard across v7x's two TCs.
    tb = max(SUBLANE, min(int(batch_tile), _round_up(B, SUBLANE)))
    tb = _round_up(tb, SUBLANE)
    if pl.cdiv(B, tb) < 2 and B > SUBLANE:
        tb = _round_up(pl.cdiv(B, 2), SUBLANE)
    n_tiles = pl.cdiv(B, tb)  # ragged edge handled by Pallas masked reads/writes

    # Inputs: x is passed unpadded & un-cast (full-extent last-dim block;
    # the per-tile bf16 cast happens in vregs).  Weights are pre-cast to the
    # matmul dtype in the wrapper; biases stay f32 for accuracy (negligible bytes).
    flat_inputs = [x]
    in_specs = [pl.BlockSpec((tb, data_dim), lambda i: (i, 0))]
    resident_bytes = 0
    for (w, b) in params:
        din, dout = w.shape
        flat_inputs += [w.astype(mm_dt), b.astype(jnp.float32).reshape(1, dout)]
        # Resident params: full-extent block, constant index_map, single
        # buffer (double-buffering a never-changing block just wastes VMEM).
        in_specs.append(pl.BlockSpec((din, dout), lambda i: (0, 0),
                                     pipeline_mode=pl.Buffered(1)))
        in_specs.append(pl.BlockSpec((1, dout), lambda i: (0, 0),
                                     pipeline_mode=pl.Buffered(1)))
        resident_bytes += din * dout * mm_dt.itemsize + dout * 4

    # Output: the true (B, embedding_dim) array — no lane padding, no
    # wrapper-side slice pass.
    out_spec = pl.BlockSpec((tb, dims[-1]), lambda i: (i, 0))
    out_shape = jax.ShapeDtypeStruct((B, dims[-1]), out_dt)

    # Advisory cost estimate for the XLA scheduler.
    flops = 2 * B * sum(dims[i] * dims[i + 1] for i in range(num_layers))
    bytes_accessed = (x.size * x.dtype.itemsize
                      + B * dims[-1] * out_dt.itemsize + resident_bytes)
    cost = pl.CostEstimate(flops=flops, transcendentals=0,
                           bytes_accessed=bytes_accessed)

    # Per-generation VMEM budget: double-buffered x/out tiles, single-buffered
    # resident params, and the coexisting live intermediates (matmul result,
    # ReLU result, bf16 copy of h), with 2x margin for Mosaic scratch.
    max_dim = max(dims)
    io_bytes = (2 * tb * data_dim * x.dtype.itemsize
                + 2 * tb * dims[-1] * out_dt.itemsize)
    act_bytes = tb * max_dim * (4 + 4 + mm_dt.itemsize)
    working_bytes = io_bytes + act_bytes + resident_bytes
    cap = _vmem_capacity_bytes()
    usable = min(max(cap - (16 << 20), 32 << 20), 100 << 20)
    vmem_limit = int(min(max(2 * working_bytes, 8 << 20), usable))
    # TODO(synk): add a K/N-tiled fallback (reduction grid axis + f32
    # accumulator scratch) for weight stacks that exceed the v7x VMEM budget.

    kernel = _make_fused_encoder_kernel(num_layers, mm_dt)
    return pl.pallas_call(
        kernel,
        out_shape=out_shape,
        grid=(n_tiles,),
        in_specs=in_specs,
        out_specs=out_spec,
        compiler_params=pltpu.CompilerParams(
            dimension_semantics=("parallel",),
            vmem_limit_bytes=vmem_limit,
        ),
        cost_estimate=cost,
    )(*flat_inputs)


def init_encoder_params(key, data_dim, compress_dims, embedding_dim,
                        dtype=jnp.float32):
    """Deterministic synthetic parameters matching Encoder.__init__ shapes."""
    dims = [data_dim] + list(compress_dims) + [embedding_dim]
    params = []
    for din, dout in zip(dims[:-1], dims[1:]):
        key, kw, kb = jax.random.split(key, 3)
        bound = 1.0 / jnp.sqrt(jnp.asarray(din, dtype))
        w = jax.random.uniform(kw, (din, dout), dtype, -bound, bound)
        b = jax.random.uniform(kb, (dout,), dtype, -bound, bound)
        params.append((w, b))
    return params


def _reference_forward(x, params, matmul_dtype=jnp.float32):
    """Pure-JAX reference; optionally mimics the bf16-matmul arithmetic."""
    h = x
    for (w, b) in params:
        y = jnp.dot(h.astype(matmul_dtype), w.astype(matmul_dtype),
                    preferred_element_type=jnp.float32)
        h = jnp.maximum(y + b.astype(jnp.float32), 0.0)
    return h


if __name__ == "__main__":
    key = jax.random.PRNGKey(0)
    k_x, k_p, k_x2 = jax.random.split(key, 3)

    # Small shapes consistent with the module:
    # Encoder(data_dim=16, compress_dims=(32, 16), embedding_dim=8).
    batch = 8
    data_dim = 16
    compress_dims = (32, 16)
    embedding_dim = 8

    params = init_encoder_params(k_p, data_dim, compress_dims, embedding_dim)

    # Check 1: default bf16-MXU path, tiny batch (single grid step).
    x = jax.random.normal(k_x, (batch, data_dim), dtype=jnp.float32)
    out = jax.block_until_ready(encoder_forward(x, params))
    assert out.shape == (batch, embedding_dim)
    ref_bf16 = _reference_forward(x, params, matmul_dtype=jnp.bfloat16)
    ref_f32 = _reference_forward(x, params)
    assert jnp.allclose(out, ref_bf16, atol=1e-4, rtol=1e-4)
    assert jnp.allclose(out, ref_f32, atol=5e-2, rtol=5e-2)

    # Check 2: ragged batch (not a tile multiple), multi-step parallel grid —
    # exercises masked edge reads/writes and multi-tile pipelining.
    x2 = jax.random.normal(k_x2, (37, data_dim), dtype=jnp.float32)
    out2 = jax.block_until_ready(encoder_forward(x2, params, batch_tile=16))
    assert out2.shape == (37, embedding_dim)
    ref2 = _reference_forward(x2, params, matmul_dtype=jnp.bfloat16)
    assert jnp.allclose(out2, ref2, atol=1e-4, rtol=1e-4)

    # Check 3: exact f32 matmul path against the f32 reference (tight tol).
    out3 = jax.block_until_ready(
        encoder_forward(x2, params, batch_tile=16, matmul_dtype=jnp.float32))
    ref3 = _reference_forward(x2, params)
    assert jnp.allclose(out3, ref3, atol=1e-5, rtol=1e-5)

    print("KERNEL_OK")
</pallas_src>

<mosaic_0001>
module attributes {stable_mosaic.version = 11 : i64} {
  func.func @kernel(%arg0: i32, %arg1: memref<8x16xf32, #tpu.memory_space<vmem>>, %arg2: memref<16x32xbf16, #tpu.memory_space<vmem>>, %arg3: memref<1x32xf32, #tpu.memory_space<vmem>>, %arg4: memref<32x16xbf16, #tpu.memory_space<vmem>>, %arg5: memref<1x16xf32, #tpu.memory_space<vmem>>, %arg6: memref<16x8xbf16, #tpu.memory_space<vmem>>, %arg7: memref<1x8xf32, #tpu.memory_space<vmem>>, %arg8: memref<8x8xf32, #tpu.memory_space<vmem>>) attributes {dimension_semantics = [#tpu.dimension_semantics<parallel>], iteration_bounds = array<i64: 1>, scalar_prefetch = 0 : i64, scratch_operands = 0 : i64, tpu.core_type = #tpu.core_type<tc>, window_params = [{transform_indices = @transform_0, window_bounds = array<i64: 8, 16>}, {pipeline_mode = #tpu.pipeline_mode<synchronous>, transform_indices = @transform_1, window_bounds = array<i64: 16, 32>}, {pipeline_mode = #tpu.pipeline_mode<synchronous>, transform_indices = @transform_2, window_bounds = array<i64: 1, 32>}, {pipeline_mode = #tpu.pipeline_mode<synchronous>, transform_indices = @transform_3, window_bounds = array<i64: 32, 16>}, {pipeline_mode = #tpu.pipeline_mode<synchronous>, transform_indices = @transform_4, window_bounds = array<i64: 1, 16>}, {pipeline_mode = #tpu.pipeline_mode<synchronous>, transform_indices = @transform_5, window_bounds = array<i64: 16, 8>}, {pipeline_mode = #tpu.pipeline_mode<synchronous>, transform_indices = @transform_6, window_bounds = array<i64: 1, 8>}, {transform_indices = @transform_7, window_bounds = array<i64: 8, 8>}]} {
    %c0 = arith.constant 0 : index
    %c0_0 = arith.constant 0 : index
    %0 = vector.load %arg1[%c0, %c0_0] : memref<8x16xf32, #tpu.memory_space<vmem>>, vector<8x16xf32>
    %1 = arith.truncf %0 : vector<8x16xf32> to vector<8x16xbf16>
    %c0_1 = arith.constant 0 : index
    %c0_2 = arith.constant 0 : index
    %2 = vector.load %arg2[%c0_1, %c0_2] : memref<16x32xbf16, #tpu.memory_space<vmem>>, vector<16x32xbf16>
    %c0_3 = arith.constant 0 : index
    %c0_4 = arith.constant 0 : index
    %3 = vector.load %arg3[%c0_3, %c0_4] : memref<1x32xf32, #tpu.memory_space<vmem>>, vector<1x32xf32>
    %cst = arith.constant dense<0.000000e+00> : vector<8x32xf32>
    %4 = tpu.matmul %1, %2, %cst {dimension_numbers = #tpu.dot_dimension_numbers<[1], [0], [0], [1], [0, 0, 1, 1], [], []>} : vector<8x16xbf16>, vector<16x32xbf16>, vector<8x32xf32> -> vector<8x32xf32>
    %5 = vector.broadcast %3 : vector<1x32xf32> to vector<8x32xf32>
    %6 = arith.addf %4, %5 : vector<8x32xf32>
    %cst_5 = arith.constant 0.000000e+00 : f32
    %7 = vector.broadcast %cst_5 : f32 to vector<8x32xf32>
    %8 = arith.maximumf %6, %7 : vector<8x32xf32>
    %9 = arith.truncf %8 : vector<8x32xf32> to vector<8x32xbf16>
    %c0_6 = arith.constant 0 : index
    %c0_7 = arith.constant 0 : index
    %10 = vector.load %arg4[%c0_6, %c0_7] : memref<32x16xbf16, #tpu.memory_space<vmem>>, vector<32x16xbf16>
    %c0_8 = arith.constant 0 : index
    %c0_9 = arith.constant 0 : index
    %11 = vector.load %arg5[%c0_8, %c0_9] : memref<1x16xf32, #tpu.memory_space<vmem>>, vector<1x16xf32>
    %cst_10 = arith.constant dense<0.000000e+00> : vector<8x16xf32>
    %12 = tpu.matmul %9, %10, %cst_10 {dimension_numbers = #tpu.dot_dimension_numbers<[1], [0], [0], [1], [0, 0, 1, 1], [], []>} : vector<8x32xbf16>, vector<32x16xbf16>, vector<8x16xf32> -> vector<8x16xf32>
    %13 = vector.broadcast %11 : vector<1x16xf32> to vector<8x16xf32>
    %14 = arith.addf %12, %13 : vector<8x16xf32>
    %cst_11 = arith.constant 0.000000e+00 : f32
    %15 = vector.broadcast %cst_11 : f32 to vector<8x16xf32>
    %16 = arith.maximumf %14, %15 : vector<8x16xf32>
    %17 = arith.truncf %16 : vector<8x16xf32> to vector<8x16xbf16>
    %c0_12 = arith.constant 0 : index
    %c0_13 = arith.constant 0 : index
    %18 = vector.load %arg6[%c0_12, %c0_13] : memref<16x8xbf16, #tpu.memory_space<vmem>>, vector<16x8xbf16>
    %c0_14 = arith.constant 0 : index
    %c0_15 = arith.constant 0 : index
    %19 = vector.load %arg7[%c0_14, %c0_15] : memref<1x8xf32, #tpu.memory_space<vmem>>, vector<1x8xf32>
    %cst_16 = arith.constant dense<0.000000e+00> : vector<8x8xf32>
    %20 = tpu.matmul %17, %18, %cst_16 {dimension_numbers = #tpu.dot_dimension_numbers<[1], [0], [0], [1], [0, 0, 1, 1], [], []>} : vector<8x16xbf16>, vector<16x8xbf16>, vector<8x8xf32> -> vector<8x8xf32>
    %21 = vector.broadcast %19 : vector<1x8xf32> to vector<8x8xf32>
    %22 = arith.addf %20, %21 : vector<8x8xf32>
    %cst_17 = arith.constant 0.000000e+00 : f32
    %23 = vector.broadcast %cst_17 : f32 to vector<8x8xf32>
    %24 = arith.maximumf %22, %23 : vector<8x8xf32>
    %c0_18 = arith.constant 0 : index
    %c0_19 = arith.constant 0 : index
    %25 = vector.load %arg8[%c0_18, %c0_19] : memref<8x8xf32, #tpu.memory_space<vmem>>, vector<8x8xf32>
    tpu.vector_store %arg8[%c0_18, %c0_19], %24 {strides = array<i32>} : memref<8x8xf32, #tpu.memory_space<vmem>>, vector<8x8xf32>,
    return
  }
  func.func @transform_0(%arg0: i32) -> (i32, i32) {
    %c0_i32 = arith.constant 0 : i32
    %c0_i32_0 = arith.constant 0 : i32
    return %arg0, %c0_i32 : i32, i32
  }
  func.func @transform_1(%arg0: i32) -> (i32, i32) {
    %c0_i32 = arith.constant 0 : i32
    %c0_i32_0 = arith.constant 0 : i32
    %c0_i32_1 = arith.constant 0 : i32
    return %c0_i32, %c0_i32_0 : i32, i32
  }
  func.func @transform_2(%arg0: i32) -> (i32, i32) {
    %c0_i32 = arith.constant 0 : i32
    %c0_i32_0 = arith.constant 0 : i32
    %c0_i32_1 = arith.constant 0 : i32
    return %c0_i32, %c0_i32_0 : i32, i32
  }
  func.func @transform_3(%arg0: i32) -> (i32, i32) {
    %c0_i32 = arith.constant 0 : i32
    %c0_i32_0 = arith.constant 0 : i32
    %c0_i32_1 = arith.constant 0 : i32
    return %c0_i32, %c0_i32_0 : i32, i32
  }
  func.func @transform_4(%arg0: i32) -> (i32, i32) {
    %c0_i32 = arith.constant 0 : i32
    %c0_i32_0 = arith.constant 0 : i32
    %c0_i32_1 = arith.constant 0 : i32
    return %c0_i32, %c0_i32_0 : i32, i32
  }
  func.func @transform_5(%arg0: i32) -> (i32, i32) {
    %c0_i32 = arith.constant 0 : i32
    %c0_i32_0 = arith.constant 0 : i32
    %c0_i32_1 = arith.constant 0 : i32
    return %c0_i32, %c0_i32_0 : i32, i32
  }
  func.func @transform_6(%arg0: i32) -> (i32, i32) {
    %c0_i32 = arith.constant 0 : i32
    %c0_i32_0 = arith.constant 0 : i32
    %c0_i32_1 = arith.constant 0 : i32
    return %c0_i32, %c0_i32_0 : i32, i32
  }
  func.func @transform_7(%arg0: i32) -> (i32, i32) {
    %c0_i32 = arith.constant 0 : i32
    %c0_i32_0 = arith.constant 0 : i32
    return %arg0, %c0_i32 : i32, i32
  }
}

</mosaic_0001>

<bundles_post_ra>
// kernel: encoder_forward.1
= control target key start
LH: loop header
LB: loop body
LE: loop exit
PB: predicated region body
PF: predicated region fallthrough
CT: control target
= control target key end

     0   :  { %v301_v1 = vmov 0.0   ;;  %vm45_vm0 = vcmask 130048   ;;  %vm302_vm1 = vmmov 0   ;;  %s373_s0 = inlined_call_operand.vmem [shape: f32[8,16], index: 0, kind: input, shape index: {}]   ;;  %s374_s1 = inlined_call_operand.vmem [shape: bf16[16,32], index: 1, kind: input, shape index: {}]   ;;  %s375_s2 = inlined_call_operand.vmem [shape: f32[1,32], index: 2, kind: input, shape index: {}]   ;;  %s376_s3 = inlined_call_operand.vmem [shape: bf16[32,16], index: 3, kind: input, shape index: {}]   ;;  %s377_s4 = inlined_call_operand.vmem [shape: f32[1,16], index: 4, kind: input, shape index: {}]   ;;  %s378_s5 = inlined_call_operand.vmem [shape: bf16[16,8], index: 5, kind: input, shape index: {}]   ;;  %s379_s6 = inlined_call_operand.vmem [shape: f32[1,8], index: 6, kind: input, shape index: {}]   ;;  %s380_s7 = inlined_call_operand.hbm [shape: f32[8,8], index: 7, kind: output, shape index: {}]  }
   0x1   :  { %v275_v0 = vld [vmem:[%s374_s1] sm:$0xff]   ;;  %252 = vmatprep.subr.bf16.mxu0 %v301_v1  ;;  %258 = vmatprep.subr.bf16.mxu1 %v301_v1 }
   0x2   :  { %v28_v2 = vld [vmem:[%s373_s0] sm:$0xff]  ;;  %253 = vmatpush3.bf16.msra.mxu0 %v275_v0  ;;  %254 = vmatprep.mubr.msk.bf16.mxu0 %vm302_vm1, %v301_v1 }
   0x3   :  { %v29_v3 = vpack.c.bf16 %v28_v2, %v28_v2  ;;  %262 = vmatprep.mubr.msk.bf16.mxu1 %vm302_vm1, %v301_v1  ;;  %266 = vmatprep.subr.bf16.mxu0 %v301_v1 }
   0x4   :  { %12 = vsyncpa [#allocation3], 0  ;;  %v276_v4 = vld [vmem:[%s376_s3 + $0x8] sm:$0xff]   ;;  %v277_v5 = vld [vmem:[%s376_s3] sm:$0xff]   ;;  %vm114_vm2 = vcmask 261120   ;;  %s303_s12 = smov [#allocation2]  }
   0x5   :  { %255 = vmatmul.mubr.msk.bf16.vlgmr.msra.gmra.mxu0 %vm45_vm0, %v29_v3  ;;  %259 = vmatpush3.bf16.msra.mxu1 %v276_v4  ;;  %v278_v6 = vld [vmem:[%s378_s5] sm:$0xff]   ;;  %s227_s13 = sshll.u32 %s303_s12, 4  ;;  %vm219_vm3 = vcmask 64512   ;;  %s228_s13 = int_to_ptr.vmem [resolvable:$true] %s227_s13 }
   0x6   :  { %268 = vmatprep.mubr.msk.bf16.mxu0 %vm302_vm1, %v301_v1  ;;  %260 = vmatprep.subr.bf16.mxu1 %v301_v1  ;;  %v235_v7 = vld [vmem:[%s375_s2] ss:$0 sm:$0xff]  ;;  %p284_p1 = scmp.lt.s32.totalorder %s228_s13, %s228_s13 }
   0x7   :  { %267 = vmatpush3.bf16.msra.mxu0 %v278_v6  ;;  %v238_v15 = vld [vmem:[%s377_s4] ss:$0 sm:$0xff]  ;;  %s279_s4 = scalar_lea.vmem %s228_s13, 128 }
   0x8   :  { %v242_v23 = vld [vmem:[%s379_s6] ss:$0 sm:$0xff]  ;;  %p280_p0 = scmp.ne.s32.totalorder %s228_s13, %s279_s4  ;;  %p285_p2 = scmp.lt.s32.totalorder %s279_s4, %s279_s4 }
   0x9   :  { %261 = vmatpush3.bf16.msra.mxu1 %v277_v5 }
   0xa   :  { %p286_p3 = por %p285_p2, %p284_p1 }
   0xc   :  { %p287_p4 = pnand %p286_p3, %p280_p0 }
  0xc5   :  { %v83_v8 = vpop.f32.mrf.mxu0 }
  0xc6   :  { %v84_v9 = vadd.f32 %v235_v7, %v83_v8 }
  0xc7   :  { %v256_v10 = vpop.f32.mrf.mxu0 }
  0xc8   :  { %v89_v11 = vmax.f32 %v84_v9, 0.0 }
  0xc9   :  { %v86_v12 = vpop.f32.mrf.mxu0 }
  0xca   :  { %v90_v13 = vpack.c.bf16 %v89_v11, %v89_v11 }
  0xcb   :  { %v257_v14 = vpop.f32.mrf.mxu0 }
  0xcc   :  { %263 = vmatmul.mubr.msk.bf16.vlgmr.msra.gmra.mxu1 %vm114_vm2, %v90_v13 }
 0x18c   :  { %v152_v16 = vpop.f32.mrf.mxu1 }
 0x18d   :  { %v153_v17 = vadd.f32 %v238_v15, %v152_v16 }
 0x18e   :  { %v264_v18 = vpop.f32.mrf.mxu1 }
 0x18f   :  { %v158_v19 = vmax.f32 %v153_v17, 0.0 }
 0x190   :  { %v155_v20 = vpop.f32.mrf.mxu1 }
 0x191   :  { %v159_v21 = vpack.c.bf16 %v158_v19, %v158_v19 }
 0x192   :  { %v265_v22 = vpop.f32.mrf.mxu1 }
 0x193   :  { %269 = vmatmul.mubr.msk.bf16.vlgmr.msra.gmra.mxu0 %vm45_vm0, %v159_v21 }
 0x253   :  { %v212_v24 = vpop.f32.mrf.mxu0 }
 0x254   :  { %v213_v25 = vadd.f32 %v242_v23, %v212_v24 }
 0x255   :  { %v270_v26 = vpop.f32.mrf.mxu0 }
 0x256   :  { %v218_v27 = vmax.f32 %v213_v25, 0.0 }
 0x257   :  { %v215_v28 = vpop.f32.mrf.mxu0 }
 0x258   :  { %220 = vst.msk [vmem:[#allocation2] sm:$0xff] %vm219_vm3, %v218_v27 }
 0x259   :  { %v271_v29 = vpop.f32.mrf.mxu0 }
 0x25a   :  { %290 = shalt.err (!%p287_p4)
}
 0x25b   :  { %230 = dma.vmem_to_hbm [thread:$0]  %s228_s13, 128, %s380_s7, [#allocation3]  }
 0x25c   :  { %299 = dma.done.wait [#allocation3], 128  }
 0x25d   :  { %300 = vsyncadd [#allocation3], 4294967168 }
 0x25e   :  { %234 = vsyncpa [#allocation3], 1 }

</bundles_post_ra>
